<compile_context>
chip_gen: v7x
topology: tpu7x:2x2x1
jax: 0.10.0
libtpu: 0.0.40
codegen_flags: <defaults>
</compile_context>

<pallas_src>
from typing import NamedTuple

import jax
import jax.numpy as jnp
from jax.experimental import pallas as pl
from jax.experimental.pallas import tpu as pltpu

NEG_SLOPE = 0.01  # PyTorch nn.LeakyReLU default
_LANE = 128
_SUBLANE = 8


def _leaky_relu(v):
    return jnp.where(v > 0, v, NEG_SLOPE * v)


def _round_up(n, m):
    return ((n + m - 1) // m) * m


def _vmem_capacity_bytes():
    try:
        cap = getattr(pltpu.get_tpu_info(), "vmem_capacity_bytes", None)
        if cap:
            return int(cap)
    except Exception:
        pass
    # Conservative fallback (valid on v7x too); only costs tile size on
    # 128 MiB parts, never correctness.
    return 64 * 1024 * 1024


def adapter_kernel(x_ref, w1t_ref, w2t_ref, h_ref, y_ref):
    # x_ref:   (tm, Ck)   Ck = c_in (aligned case) or c_in padded to 128
    # w1t_ref: (Ck, Bk)   grid-invariant, single-buffered
    # w2t_ref: (Bk, Ck)   grid-invariant, single-buffered
    # h_ref:   (tm, bottleneck)   logical (unpadded) width
    # y_ref:   (tm, c_in)         logical (unpadded) width
    h_full = jnp.dot(x_ref[...], w1t_ref[...],
                     preferred_element_type=jnp.float32)
    h_full = _leaky_relu(h_full).astype(h_ref.dtype)  # stored precision
    bn = h_ref.shape[-1]
    h_ref[...] = h_full if h_full.shape[-1] == bn else h_full[:, :bn]

    # fc2 consumes the stored-precision h (PyTorch feeds the returned h into
    # fc2).  Padded h columns are exactly zero (zero weight cols and
    # LeakyReLU(0) == 0) and padded w2t rows are zero, so using the padded h
    # is mathematically exact.
    y_full = jnp.dot(h_full.astype(w2t_ref.dtype), w2t_ref[...],
                     preferred_element_type=jnp.float32)
    y_full = _leaky_relu(y_full).astype(y_ref.dtype)
    c = y_ref.shape[-1]
    y_ref[...] = y_full if y_full.shape[-1] == c else y_full[:, :c]


class AdapterParams(NamedTuple):
    w1t: jax.Array    # (Ck, Bk) transposed (+lane-padded / cast) fc1 weight
    w2t: jax.Array    # (Bk, Ck) transposed (+lane-padded / cast) fc2 weight
    c_in: int
    bottleneck: int


def prepare_adapter(w1, w2, *, compute_dtype=None):
    """One-time weight preparation (hoisted out of the per-call path).

    w1: (bottleneck, c_in)  nn.Linear(c_in, bottleneck).weight
    w2: (c_in, bottleneck)  nn.Linear(bottleneck, c_in).weight
    compute_dtype: optional MXU operand dtype (e.g. jnp.bfloat16 on v6e/v7x).
    """
    bottleneck, c_in = w1.shape
    assert w2.shape == (c_in, bottleneck)
    wdt = compute_dtype if compute_dtype is not None else w1.dtype
    w1t = jnp.transpose(w1).astype(wdt)   # (c_in, bottleneck)
    w2t = jnp.transpose(w2).astype(wdt)   # (bottleneck, c_in)
    ck = _round_up(c_in, _LANE)
    bk = _round_up(bottleneck, _LANE)
    if (ck, bk) != (c_in, bottleneck):
        # Zero padding is exact under LeakyReLU (LeakyReLU(0) == 0).
        w1t = jnp.pad(w1t, ((0, ck - c_in), (0, bk - bottleneck)))
        w2t = jnp.pad(w2t, ((0, bk - bottleneck), (0, ck - c_in)))
    return AdapterParams(w1t=w1t, w2t=w2t, c_in=c_in, bottleneck=bottleneck)


def adapter_forward(x, params, *, tm=None):
    """x: (N, c_in). Returns (h, y) matching PyTorch Adapter.forward."""
    N, c_in = x.shape
    assert c_in == params.c_in
    bottleneck = params.bottleneck
    w1t, w2t = params.w1t, params.w2t
    ck, bk = w1t.shape
    out_dtype = x.dtype

    # Cast x to the MXU operand dtype chosen at prepare time (no-op if equal).
    x_in = x if x.dtype == w1t.dtype else x.astype(w1t.dtype)
    # Ragged c_in: pad lanes of x (single copy).  The common 128-aligned CLIP
    # case takes the zero-copy path (no pad, no post-kernel slice).
    if ck != c_in:
        x_in = jnp.pad(x_in, ((0, 0), (0, ck - c_in)))

    in_isz = jnp.dtype(x_in.dtype).itemsize
    w_isz = jnp.dtype(w1t.dtype).itemsize
    out_isz = jnp.dtype(out_dtype).itemsize

    cap = _vmem_capacity_bytes()
    if tm is None:
        # Bigger row tiles on 128 MiB parts (v5e/v6e); smaller default on 64 MiB v7x.
        tm = 1024 if cap >= 96 * 1024 * 1024 else 512
    tm = max(_SUBLANE, (int(tm) // _SUBLANE) * _SUBLANE)

    # VMEM-footprint-aware row-tile clamp.
    # Weights single-buffered (Buffered(1)); x / h / y double-buffered.
    w_bytes = 2 * ck * bk * w_isz
    row_bytes = 2 * (ck * in_isz + bk * out_isz + ck * out_isz)
    headroom = 8 * 1024 * 1024          # Mosaic internal scratch / semaphores
    tile_budget = int(0.80 * cap) - w_bytes - headroom
    tm_fit = max(_SUBLANE,
                 (tile_budget // max(row_bytes, 1)) // _SUBLANE * _SUBLANE)

    # Keep at least two grid steps so both TensorCores get work on 2-TC parts
    # (v7x); at most one harmless extra step on single-TC chips.
    tm_two = _round_up(pl.cdiv(N, 2), _SUBLANE)

    tm_eff = max(_SUBLANE, min(tm, tm_fit, tm_two))

    tile_bytes = w_bytes + tm_eff * row_bytes
    vmem_limit = int(min(int(0.85 * cap),
                         max(tile_bytes + headroom, 32 * 1024 * 1024)))

    grid = (pl.cdiv(N, tm_eff),)   # cdiv grid: last row block is clipped, not padded

    h, y = pl.pallas_call(
        adapter_kernel,
        out_shape=(
            jax.ShapeDtypeStruct((N, bottleneck), out_dtype),
            jax.ShapeDtypeStruct((N, c_in), out_dtype),
        ),
        grid_spec=pltpu.PrefetchScalarGridSpec(
            num_scalar_prefetch=0,
            grid=grid,
            in_specs=[
                pl.BlockSpec((tm_eff, ck), lambda i: (i, 0)),
                pl.BlockSpec((ck, bk), lambda i: (0, 0),
                             pipeline_mode=pl.Buffered(1)),
                pl.BlockSpec((bk, ck), lambda i: (0, 0),
                             pipeline_mode=pl.Buffered(1)),
            ],
            out_specs=[
                pl.BlockSpec((tm_eff, bottleneck), lambda i: (i, 0)),
                pl.BlockSpec((tm_eff, c_in), lambda i: (i, 0)),
            ],
        ),
        compiler_params=pltpu.CompilerParams(
            dimension_semantics=("parallel",),
            vmem_limit_bytes=vmem_limit,
        ),
    )(x_in, w1t, w2t)
    return h, y


def adapter_apply(x, w1, w2, *, compute_dtype=None, tm=None):
    """Convenience: prepare + forward in one call (weights not hoisted)."""
    return adapter_forward(x, prepare_adapter(w1, w2, compute_dtype=compute_dtype), tm=tm)


def _reference(x, w1, w2):
    h = _leaky_relu(x @ w1.T)
    y = _leaky_relu(h @ w2.T)
    return h, y


if __name__ == "__main__":
    key = jax.random.PRNGKey(0)
    k = jax.random.split(key, 6)

    # Case 1: 128-aligned CLIP-like dims -> zero-copy fast path (no pad/slice).
    N1, C1, B1 = 20, 256, 128
    x1 = jax.random.normal(k[0], (N1, C1), dtype=jnp.float32)
    w1a = jax.random.normal(k[1], (B1, C1), dtype=jnp.float32) * 0.02
    w2a = jax.random.normal(k[2], (C1, B1), dtype=jnp.float32) * 0.02
    params_a = prepare_adapter(w1a, w2a)          # one-time weight prep
    h1, y1 = adapter_forward(x1, params_a)
    jax.block_until_ready((h1, y1))
    h1_ref, y1_ref = _reference(x1, w1a, w2a)
    assert h1.shape == (N1, B1) and y1.shape == (N1, C1)
    assert jnp.allclose(h1, h1_ref, atol=1e-4, rtol=1e-4)
    assert jnp.allclose(y1, y1_ref, atol=1e-4, rtol=1e-4)

    # Case 2: ragged dims -> lane-only padding of x/weights, masked output stores.
    N2, C2, B2 = 13, 48, 80
    x2 = jax.random.normal(k[3], (N2, C2), dtype=jnp.float32)
    w1b = jax.random.normal(k[4], (B2, C2), dtype=jnp.float32) * 0.02
    w2b = jax.random.normal(k[5], (C2, B2), dtype=jnp.float32) * 0.02
    h2, y2 = adapter_forward(x2, prepare_adapter(w1b, w2b))
    jax.block_until_ready((h2, y2))
    h2_ref, y2_ref = _reference(x2, w1b, w2b)
    assert h2.shape == (N2, B2) and y2.shape == (N2, C2)
    assert jnp.allclose(h2, h2_ref, atol=1e-4, rtol=1e-4)
    assert jnp.allclose(y2, y2_ref, atol=1e-4, rtol=1e-4)

    # Case 3: bf16 MXU operands (v6e/v7x fast path), f32 accumulation, f32 outputs.
    params_bf16 = prepare_adapter(w1a, w2a, compute_dtype=jnp.bfloat16)
    h3, y3 = adapter_forward(x1, params_bf16)
    jax.block_until_ready((h3, y3))
    assert h3.dtype == x1.dtype and y3.dtype == x1.dtype
    assert jnp.allclose(h3, h1_ref, atol=5e-2, rtol=5e-2)
    assert jnp.allclose(y3, y1_ref, atol=5e-2, rtol=5e-2)

    print("KERNEL_OK")
</pallas_src>

<mosaic_0001>
module attributes {stable_mosaic.version = 11 : i64} {
  func.func @adapter_kernel(%arg0: i32, %arg1: memref<16x256xf32, #tpu.memory_space<vmem>>, %arg2: memref<256x128xf32, #tpu.memory_space<vmem>>, %arg3: memref<128x256xf32, #tpu.memory_space<vmem>>, %arg4: memref<16x128xf32, #tpu.memory_space<vmem>>, %arg5: memref<16x256xf32, #tpu.memory_space<vmem>>) attributes {dimension_semantics = [#tpu.dimension_semantics<parallel>], iteration_bounds = array<i64: 2>, scalar_prefetch = 0 : i64, scratch_operands = 0 : i64, tpu.core_type = #tpu.core_type<tc>, window_params = [{transform_indices = @transform_0, window_bounds = array<i64: 16, 256>}, {pipeline_mode = #tpu.pipeline_mode<synchronous>, transform_indices = @transform_1, window_bounds = array<i64: 256, 128>}, {pipeline_mode = #tpu.pipeline_mode<synchronous>, transform_indices = @transform_2, window_bounds = array<i64: 128, 256>}, {transform_indices = @transform_3, window_bounds = array<i64: 16, 128>}, {transform_indices = @transform_4, window_bounds = array<i64: 16, 256>}]} {
    %c0 = arith.constant 0 : index
    %c0_0 = arith.constant 0 : index
    %0 = vector.load %arg1[%c0, %c0_0] : memref<16x256xf32, #tpu.memory_space<vmem>>, vector<16x256xf32>
    %c0_1 = arith.constant 0 : index
    %c0_2 = arith.constant 0 : index
    %1 = vector.load %arg2[%c0_1, %c0_2] : memref<256x128xf32, #tpu.memory_space<vmem>>, vector<256x128xf32>
    %cst = arith.constant dense<0.000000e+00> : vector<16x128xf32>
    %2 = tpu.matmul %0, %1, %cst {dimension_numbers = #tpu.dot_dimension_numbers<[1], [0], [0], [1], [0, 0, 1, 1], [], []>} : vector<16x256xf32>, vector<256x128xf32>, vector<16x128xf32> -> vector<16x128xf32>
    %cst_3 = arith.constant 0.000000e+00 : f32
    %3 = vector.broadcast %cst_3 : f32 to vector<16x128xf32>
    %4 = arith.cmpf ogt, %2, %3 : vector<16x128xf32>
    %cst_4 = arith.constant 0.00999999977 : f32
    %5 = vector.broadcast %cst_4 : f32 to vector<16x128xf32>
    %6 = arith.mulf %5, %2 : vector<16x128xf32>
    %7 = arith.select %4, %2, %6 : vector<16x128xi1>, vector<16x128xf32>
    %c0_5 = arith.constant 0 : index
    %c0_6 = arith.constant 0 : index
    %8 = vector.load %arg4[%c0_5, %c0_6] : memref<16x128xf32, #tpu.memory_space<vmem>>, vector<16x128xf32>
    tpu.vector_store %arg4[%c0_5, %c0_6], %7 {strides = array<i32>} : memref<16x128xf32, #tpu.memory_space<vmem>>, vector<16x128xf32>,
    %c0_7 = arith.constant 0 : index
    %c0_8 = arith.constant 0 : index
    %9 = vector.load %arg3[%c0_7, %c0_8] : memref<128x256xf32, #tpu.memory_space<vmem>>, vector<128x256xf32>
    %cst_9 = arith.constant dense<0.000000e+00> : vector<16x256xf32>
    %10 = tpu.matmul %7, %9, %cst_9 {dimension_numbers = #tpu.dot_dimension_numbers<[1], [0], [0], [1], [0, 0, 1, 1], [], []>} : vector<16x128xf32>, vector<128x256xf32>, vector<16x256xf32> -> vector<16x256xf32>
    %cst_10 = arith.constant 0.000000e+00 : f32
    %11 = vector.broadcast %cst_10 : f32 to vector<16x256xf32>
    %12 = arith.cmpf ogt, %10, %11 : vector<16x256xf32>
    %cst_11 = arith.constant 0.00999999977 : f32
    %13 = vector.broadcast %cst_11 : f32 to vector<16x256xf32>
    %14 = arith.mulf %13, %10 : vector<16x256xf32>
    %15 = arith.select %12, %10, %14 : vector<16x256xi1>, vector<16x256xf32>
    %c0_12 = arith.constant 0 : index
    %c0_13 = arith.constant 0 : index
    %16 = vector.load %arg5[%c0_12, %c0_13] : memref<16x256xf32, #tpu.memory_space<vmem>>, vector<16x256xf32>
    tpu.vector_store %arg5[%c0_12, %c0_13], %15 {strides = array<i32>} : memref<16x256xf32, #tpu.memory_space<vmem>>, vector<16x256xf32>,
    return
  }
  func.func @transform_0(%arg0: i32) -> (i32, i32) {
    %c0_i32 = arith.constant 0 : i32
    %c0_i32_0 = arith.constant 0 : i32
    return %arg0, %c0_i32 : i32, i32
  }
  func.func @transform_1(%arg0: i32) -> (i32, i32) {
    %c0_i32 = arith.constant 0 : i32
    %c0_i32_0 = arith.constant 0 : i32
    %c0_i32_1 = arith.constant 0 : i32
    return %c0_i32, %c0_i32_0 : i32, i32
  }
  func.func @transform_2(%arg0: i32) -> (i32, i32) {
    %c0_i32 = arith.constant 0 : i32
    %c0_i32_0 = arith.constant 0 : i32
    %c0_i32_1 = arith.constant 0 : i32
    return %c0_i32, %c0_i32_0 : i32, i32
  }
  func.func @transform_3(%arg0: i32) -> (i32, i32) {
    %c0_i32 = arith.constant 0 : i32
    %c0_i32_0 = arith.constant 0 : i32
    return %arg0, %c0_i32 : i32, i32
  }
  func.func @transform_4(%arg0: i32) -> (i32, i32) {
    %c0_i32 = arith.constant 0 : i32
    %c0_i32_0 = arith.constant 0 : i32
    return %arg0, %c0_i32 : i32, i32
  }
}

</mosaic_0001>

<bundles_post_ra>
// kernel: tpu_custom_call.1
= control target key start
LH: loop header
LB: loop body
LE: loop exit
PB: predicated region body
PF: predicated region fallthrough
CT: control target
= control target key end

     0   :  { %10 = vsyncpa [#allocation3], 0  ;;  %s1461_s0 = inlined_call_operand.hbm [shape: f32[20,256], index: 0, kind: input, shape index: {}]   ;;  %s1462_s1 = inlined_call_operand.hbm [shape: f32[256,128], index: 1, kind: input, shape index: {}]   ;;  %s1463_s2 = inlined_call_operand.hbm [shape: f32[128,256], index: 2, kind: input, shape index: {}]   ;;  %s1464_s3 = inlined_call_operand.hbm [shape: f32[20,128], index: 3, kind: output, shape index: {0}]   ;;  %s1465_s4 = inlined_call_operand.hbm [shape: f32[20,256], index: 4, kind: output, shape index: {1}]  }
   0x1   :  { %12 = vsyncpa [#allocation3 + $0x1], 0 }
   0x2   :  { %13 = vsyncpa [#allocation6], 0 }
   0x3   :  { %14 = vsyncpa [#allocation4], 0 }
   0x4   :  { %16 = vsyncpa [#allocation4 + $0x1], 0 }
   0x5   :  { %17 = vsyncpa [#allocation10], 0 }
   0x6   :  { %19 = vsyncpa [#allocation10 + $0x1], 0  ;;  %s1149_s15 = smov 0   ;;  %s1151_s16 = smov 0  }
   0x7   :  { %s1153_s17 = smov 0   ;;  %s1155_s18 = smov 0  }
   0x8 LB: > { %s1170_s19 = sadd.s32 4294967295, %s1106_s18   ;;  %s698_s20 = sadd.s32 4294967294, %s1106_s18   ;;  %s1106_s18 = sphi %s1155_s18, %s1486_s18   ;;  %s1102_s17 = sphi %s1153_s17, %s1485_s17   ;;  %s1098_s16 = sphi %s1151_s16, %s1484_s16   ;;  %s1094_s15 = sphi %s1149_s15, %s1483_s15  }
   0x9   : > { %s1174_s21 = sadd.s32 1, %s1106_s18   ;;  %s32_s22 = sadd.s32 1, %s1102_s17 }
   0xa   : > { %s29_s23 = ssub.s32 %s1106_s18, %s1174_s21  ;;  %p39_p0 = scmp.ne.s32.totalorder %s1102_s17, %s1098_s16 }
   0xb   : > { %p30_p1 = scmp.eq.s32.totalorder %s29_s23, 0  ;;  %p40_p2 = scmp.eq.s32.totalorder %s1106_s18, 0 }
   0xc   : > { %p45_p3 = scmp.ne.s32.totalorder %s1098_s16, %s1094_s15  ;;  %p1466_p4 = scmp.eq.s32.totalorder %s1170_s19, 0 }
   0xd   : > { %s1186_s24 = scalar_select %p30_p1, %s1102_s17, %s32_s22  }
   0xe   : > { %p1188_p5 = por %p40_p2, %p39_p0  ;;  %p1194_p6 = por %p1466_p4, %p45_p3 }
   0xf   : > { %p111_p7 = scmp.eq.s32.totalorder %s1170_s19, 1  ;;  %p117_p8 = scmp.eq.s32.totalorder %s698_s20, 1 }
  0x10   : > { %s1469_s25 = scalar_select %p1188_p5, 1, 0 }
  0x11   : > { %s1470_s26 = scalar_select %p1194_p6, 1, 0 }
  0x12   : > { %p699_p9 = scmp.ge.s32.totalorder %s1106_s18, 1  ;;  %p150_p10 = scmp.lt.s32.totalorder %s1106_s18, 3 }
  0x13   : > { %p1201_p11 = por %p111_p7, %p39_p0  ;;  %p1205_p12 = por %p117_p8, %p45_p3 }
  0x14   : > { %p1209_p13 = pnand %p699_p9, %p150_p10  ;;  %s1108_s30 = smov [#allocation5]  }
  0x15   : > { %s1471_s27 = scalar_select %p1201_p11, 1, 0 }
  0x16   : > { %s1472_s28 = scalar_select %p1205_p12, 1, 0 }
  0x17   : > { %s1473_s29 = scalar_select %p1209_p13, 1, 0 }
  0x18   : > { %p856_p1 = pneg %p1209_p13  ;;  %s162_s5 = sshll.u32 %s1108_s30, 4  ;;  %s163_s5 = int_to_ptr.vmem [resolvable:$true] %s162_s5 }
  0x19   : > { %s1109_s7 = smov [#allocation7]   ;;  %s920_s11 = scalar_lea.hbm %s1462_s1, 4096 }
  0x1a   : > { %p1217_p2 = pnand %p856_p1, %p1466_p4  ;;  %s175_s8 = sshll.u32 %s1109_s7, 4  ;;  %s1221_s8 = int_to_ptr.vmem [resolvable:$true] %s175_s8 }
  0x1b   : > { %p921_p0 = scmp.ne.s32.totalorder %s1462_s1, %s920_s11  ;;  %p927_p9 = scmp.lt.u32.totalorder %s920_s11, %s1462_s1 }
  0x1c   : > { %p922_p3 = pneg %p1217_p2 }
  0x1e   : > { %p923_p7 = pnand %p922_p3, %p921_p0 }
  0x20   : > { %p924_p8 = pneg %p923_p7 }
  0x22   : > { %p929_p10 = pnand %p927_p9, %p924_p8 }
  0x24   : > { %932 = shalt.err (!%p929_p10)
}
  0x25   : > { %s933_s22 = scalar_lea.vmem %s163_s5, 4096  ;;  %p941_p11 = scmp.lt.s32.totalorder %s163_s5, %s163_s5 }
  0x26   : > { %p934_p1 = scmp.ne.s32.totalorder %s163_s5, %s933_s22  ;;  %p942_p6 = scmp.lt.s32.totalorder %s933_s22, %s933_s22 }
  0x28   : > { %p936_p4 = pnand %p934_p1, %p922_p3  ;;  %p943_p13 = por %p942_p6, %p941_p11 }
  0x2a   : > { %p937_p12 = pneg %p936_p4 }
  0x2c   : > { %p944_p5 = pnand %p943_p13, %p937_p12 }
  0x2e   : > { %947 = shalt.err (!%p944_p5)
}
  0x2f   : > { %s1110_s23 = smov 128   ;;  %s1111_s30 = smov 8  }
  0x30   : > { %859 = dma.hbm_to_vmem [thread:$0]  (!%p1217_p2), %s1462_s1, 4096, %s163_s5, [#allocation6], %s1110_s23, %s1110_s23, %s1111_s30  }
  0x31   : > { %s948_s12 = scalar_lea.hbm %s1463_s2, 4096 }
  0x32   : > { %p949_p4 = scmp.ne.s32.totalorder %s1463_s2, %s948_s12  ;;  %p955_p11 = scmp.lt.u32.totalorder %s948_s12, %s1463_s2 }
  0x34   : > { %p951_p5 = pnand %p949_p4, %p922_p3 }
  0x36   : > { %p952_p6 = pneg %p951_p5 }
  0x38   : > { %p957_p12 = pnand %p955_p11, %p952_p6 }
  0x3a   : > { %960 = shalt.err (!%p957_p12)
}
  0x3b   : > { %s961_s5 = scalar_lea.vmem %s1221_s8, 4096  ;;  %p969_p8 = scmp.lt.s32.totalorder %s1221_s8, %s1221_s8 }
  0x3c   : > { %p962_p13 = scmp.ne.s32.totalorder %s1221_s8, %s961_s5  ;;  %p970_p9 = scmp.lt.s32.totalorder %s961_s5, %s961_s5 }
  0x3e   : > { %p964_p0 = pnand %p962_p13, %p922_p3  ;;  %p971_p10 = por %p970_p9, %p969_p8 }
  0x40   : > { %p965_p7 = pneg %p964_p0 }
  0x42   : > { %p972_p1 = pnand %p971_p10, %p965_p7 }
  0x44   : > { %975 = shalt.err (!%p972_p1)
}
  0x45   : > { %s1112_s23 = smov 256   ;;  %s1113_s30 = smov 16  }
  0x46   : > { %862 = dma.hbm_to_vmem [thread:$0]  (!%p1217_p2), %s1463_s2, 4096, %s1221_s8, [#allocation6], %s1112_s23, %s1112_s23, %s1113_s30  }
  0x47   : > { %p702_p4 = scmp.ge.s32.totalorder %s1106_s18, 2 }
  0x48   : > { %p1475_p3 = scmp.ne.s32.totalorder (!%p702_p4), %s1469_s25, 0 }
  0x49   : > { %185 = sbr.rel (%p702_p4) target bundleno = 115 (0x73), region = 24 }
  0x50   : > { %188 = sbr.rel (!%p1475_p3) target bundleno = 115 (0x73), region = 28  ;;  %s189_s10 = sand.u32 (%p1475_p3), 1, %s1102_s17  }
  0x51   : > { %s704_s11 = sshll.u32 (%p1475_p3), %s1106_s18, 1  ;;  %s703_s12 = sshll.u32 (%p1475_p3), %s189_s10, 5 }
  0x52   : > { %s195_s13 = ssub.s32 (%p1475_p3), 3, %s704_s11  ;;  %s1280_s14 = scalar_lea.sflag (%p1475_p3), [#allocation3], %s189_s10 }
  0x53   : > { %p196_p5 = scmp.lt.s32.totalorder (%p1475_p3), %s195_s13, 2  ;;  %s193_s20 = scalar_lea.vmem (%p1475_p3), [#allocation2], %s703_s12 }
  0x57   : > { %s1488_s13 = smov (!%p196_p5, %s195_s13), 2 }
  0x58   : > { %s1277_s6 = sshll.u32 %s1488_s13, 8 }
  0x59   : > { %s201_s8 = ssub.s32 512, %s1277_s6 }
  0x5a   : > { %202 = vsyncadd %s1280_s14, %s201_s8  ;;  %p707_p2 = scmp.ne.s32.totalorder %s1277_s6, 0  ;;  %s738_s25 = sshll.u32 %s1106_s18, 9 }
  0x5b   : > { %s1288_s23 = scalar_lea.hbm %s1461_s0, %s738_s25  ;;  %s208_s30 = sshll.u32 %s193_s20, 4  ;;  %s1290_s30 = int_to_ptr.vmem [resolvable:$true] %s208_s30 }
  0x5c   : > { %s976_s7 = scalar_lea.hbm %s1288_s23, %s1277_s6  ;;  %s980_s11 = scalar_lea.hbm %s1461_s0, 768 }
  0x5d   : > { %p977_p6 = scmp.ne.s32.totalorder %s1288_s23, %s976_s7  ;;  %p981_p13 = scmp.lt.u32.totalorder %s1288_s23, %s1461_s0 }
  0x5e   : > { %p982_p0 = scmp.lt.u32.totalorder %s980_s11, %s976_s7  ;;  %p984_p8 = scmp.lt.u32.totalorder %s976_s7, %s1288_s23 }
  0x5f   : > { %p978_p11 = pnand %p977_p6, %p707_p2 }
  0x60   : > { %p983_p7 = por %p982_p0, %p981_p13 }
  0x61   : > { %p979_p12 = pneg %p978_p11 }
  0x62   : > { %p985_p9 = por %p984_p8, %p983_p7 }
  0x64   : > { %p986_p10 = pnand %p985_p9, %p979_p12 }
  0x66   : > { %989 = shalt.err (!%p986_p10)
}
  0x67   : > { %s990_s8 = scalar_lea.vmem %s1290_s30, %s1277_s6  ;;  %s1114_s20 = smov [#allocation2]  }
  0x68   : > { %p991_p1 = scmp.ne.s32.totalorder %s1290_s30, %s990_s8  ;;  %s994_s25 = sshll.u32 %s1114_s20, 4  ;;  %s995_s25 = int_to_ptr.vmem [resolvable:$false] %s994_s25 }
  0x69   : > { %s996_s22 = scalar_lea.vmem %s995_s25, 1024  ;;  %p997_p6 = scmp.lt.s32.totalorder %s1290_s30, %s995_s25 }
  0x6a   : > { %p992_p3 = pnand %p991_p1, %p707_p2  ;;  %p998_p11 = scmp.lt.s32.totalorder %s996_s22, %s990_s8 }
  0x6c   : > { %p993_p5 = pneg %p992_p3  ;;  %p999_p13 = por %p998_p11, %p997_p6 }
  0x6e   : > { %p1000_p0 = pnand %p999_p13, %p993_p5 }
  0x70   : > { %1003 = shalt.err (!%p1000_p0)
}
  0x71   : > { %s1115_s5 = smov 256   ;;  %s1116_s7 = smov 16  }
  0x72   : > { %214 = dma.hbm_to_vmem [thread:$0]  (%p707_p2), %s1288_s23, %s1277_s6, %s1290_s30, %s1280_s14, %s1115_s5, %s1115_s5, %s1116_s7  }
  0x73 PF: > { %p1476_p12 = scmp.ne.s32.totalorder %s1473_s29, 0 }
  0x74   : > { %s1320_s9 = sand.u32 (!%p1476_p12), 1, %s1098_s16   ;;  %p1477_p7 = scmp.ne.s32.totalorder (!%p1476_p12), %s1470_s26, 0 }
  0x75   : > { %220 = sbr.rel (%p1476_p12) target bundleno = 667 (0x29b), region = 32  ;;  %s713_s10 = sshll.u32 (!%p1476_p12), %s1320_s9, 5 }
  0x76   : > { %s223_s11 = scalar_lea.sflag (!%p1476_p12), [#allocation3], %s1320_s9  ;;  %s1326_s12 = scalar_lea.vmem (!%p1476_p12), [#allocation2], %s713_s10 }
  0x7c   : > { %1077 = dma.done.wait (%p1477_p7), %s223_s11, 512  }
  0x7d   : > { %1079 = vsyncadd (%p1477_p7), %s223_s11, 4294966784  ;;  %p1478_p2 = scmp.eq.s32.totalorder %s1170_s19, 0 }
  0x7f   : > { %1081 = dma.done.wait (%p1478_p2), [#allocation6], 8192   ;;  %p1479_p8 = pmov %p1478_p2 }
  0x80   : > { %v301_v0 = vld [vmem:[#allocation5 + $0x80] sm:$0xff]  ;;  %v302_v1 = vld [vmem:[#allocation5 + $0x88] sm:$0xff]  ;;  %v303_v5 = vld [vmem:[#allocation5 + $0x90] sm:$0xff]  ;;  %s716_s26 = sshll.u32 %s1320_s9, 4  ;;  %s1347_s6 = scalar_lea.vmem [#allocation9], %s713_s10 }
  0x81   : > { %1083 = vsyncadd (%p1479_p8), [#allocation6], 4294959104  ;;  %v285_v2 = vld [vmem:[#allocation5] sm:$0xff]  ;;  %v781_v3 = vpack.c.bf16 %v302_v1, %v301_v0  ;;  %v286_v4 = vld [vmem:[#allocation5 + $0x8] sm:$0xff]  ;;  %s1341_s29 = scalar_lea.vmem [#allocation8], %s716_s26  ;;  %s526_s14 = scalar_lea.sflag [#allocation4], %s1320_s9 }
  0x82   : > { %v304_v6 = vld [vmem:[#allocation5 + $0x98] sm:$0xff]  ;;  %v783_v7 = vpack.c.bf16 %v286_v4, %v285_v2  ;;  %v287_v9 = vld [vmem:[#allocation5 + $0x10] sm:$0xff]  ;;  %v305_v11 = vld [vmem:[#allocation5 + $0xa0] sm:$0xff]  ;;  %s531_s23 = scalar_lea.sflag [#allocation10], %s1320_s9  ;;  %p1480_p9 = scmp.ne.s32.totalorder %s1471_s27, 0 }
  0x83   : > { %v785_v8 = vpack.c.bf16 %v304_v6, %v303_v5  ;;  %v288_v10 = vld [vmem:[#allocation5 + $0x18] sm:$0xff]  ;;  %782 = vmatprep.subr.bf16.mxu0 %v781_v3  ;;  %v306_v12 = vld [vmem:[#allocation5 + $0xa8] sm:$0xff]  ;;  %v289_v15 = vld [vmem:[#allocation5 + $0x20] sm:$0xff]  ;;  %s720_s30 = sshll.u32 (%p1480_p9), %s1170_s19, 1 }
  0x84   : > { %784 = vmatpush3.bf16.msra.mxu0 %v783_v7  ;;  %v787_v13 = vpack.c.bf16 %v288_v10, %v287_v9  ;;  %v789_v14 = vpack.c.bf16 %v306_v12, %v305_v11  ;;  %v290_v16 = vld [vmem:[#allocation5 + $0x28] sm:$0xff]  ;;  %v307_v17 = vld [vmem:[#allocation5 + $0xb0] sm:$0xff]  ;;  %v308_v18 = vld [vmem:[#allocation5 + $0xb8] sm:$0xff]  ;;  %s539_s13 = ssub.s32 (%p1480_p9), 3, %s720_s30 }
  0x85   : > { %786 = vmatprep.subr.bf16.mxu0 %v785_v8  ;;  %v791_v19 = vpack.c.bf16 %v290_v16, %v289_v15  ;;  %v793_v20 = vpack.c.bf16 %v308_v18, %v307_v17  ;;  %v291_v21 = vld [vmem:[#allocation5 + $0x30] sm:$0xff]  ;;  %v292_v22 = vld [vmem:[#allocation5 + $0x38] sm:$0xff]  ;;  %v309_v23 = vld [vmem:[#allocation5 + $0xc0] sm:$0xff]  ;;  %p540_p10 = scmp.lt.s32.totalorder (%p1480_p9), %s539_s13, 2 }
  0x86   : > { %v310_v24 = vld [vmem:[#allocation5 + $0xc8] sm:$0xff]  ;;  %v293_v26 = vld [vmem:[#allocation5 + $0x40] sm:$0xff]  ;;  %v795_v28 = vpack.c.bf16 %v292_v22, %v291_v21  ;;  %v311_v29 = vld [vmem:[#allocation5 + $0xd0] sm:$0xff] }
  0x87   : > { %v282_v25 = vld [vmem:[%s1326_s12 + $0x8] sm:$0xff]  ;;  %v312_v30 = vld [vmem:[#allocation5 + $0xd8] sm:$0xff]  ;;  %v400_v33 = vld [vmem:[#allocation7] sm:$0xff]  ;;  %v797_v34 = vpack.c.bf16 %v310_v24, %v309_v23 }
  0x88   : > { %788 = vmatpush3.bf16.msra.mxu0 %v787_v13  ;;  %v294_v27 = vld [vmem:[#allocation5 + $0x48] sm:$0xff]  ;;  %381 = vmatprep.mubr.f32.mxu0 %v282_v25  ;;  %v403_v32 = vld [vmem:[#allocation7 + $0x18] sm:$0xff]  ;;  %v402_v36 = vld [vmem:[#allocation7 + $0x10] sm:$0xff]  ;;  %v801_v49 = vpack.c.bf16 %v312_v30, %v311_v29 }
  0x89   : > { %790 = vmatprep.subr.bf16.mxu0 %v789_v14  ;;  %v401_v31 = vld [vmem:[#allocation7 + $0x8] sm:$0xff]  ;;  %v407_v38 = vld [vmem:[#allocation7 + $0x38] sm:$0xff]  ;;  %v815_v39 = vpack.c.bf16 %v402_v36, %v400_v33  ;;  %v404_v41 = vld [vmem:[#allocation7 + $0x20] sm:$0xff]  ;;  %v799_v45 = vpack.c.bf16 %v294_v27, %v293_v26  ;;  %v1117_v36 = vmov 0.0  }
  0x8a   : > { %v813_v35 = vpack.c.bf16 %v403_v32, %v401_v31  ;;  %v405_v37 = vld [vmem:[#allocation7 + $0x28] sm:$0xff]  ;;  %v406_v42 = vld [vmem:[#allocation7 + $0x30] sm:$0xff]  ;;  %v411_v44 = vld [vmem:[#allocation7 + $0x58] sm:$0xff]  ;;  %496 = vmatprep.mubr.f32.mxu1 %v1117_v36 }
  0x8b   : > { %v817_v40 = vpack.c.bf16 %v407_v38, %v405_v37  ;;  %v409_v43 = vld [vmem:[#allocation7 + $0x48] sm:$0xff]  ;;  %v295_v46 = vld [vmem:[#allocation5 + $0x50] sm:$0xff]  ;;  %v296_v47 = vld [vmem:[#allocation5 + $0x58] sm:$0xff]  ;;  %v819_v48 = vpack.c.bf16 %v406_v42, %v404_v41 }
  0x8c   : > { %792 = vmatpush3.bf16.msra.mxu0 %v791_v19  ;;  %814 = vmatprep.subr.bf16.mxu1 %v813_v35  ;;  %v313_v50 = vld [vmem:[#allocation5 + $0xe0] sm:$0xff]  ;;  %v821_v51 = vpack.c.bf16 %v411_v44, %v409_v43  ;;  %v410_v53 = vld [vmem:[#allocation7 + $0x50] sm:$0xff]  ;;  %v314_v54 = vld [vmem:[#allocation5 + $0xe8] sm:$0xff]  ;;  %v803_v57 = vpack.c.bf16 %v296_v47, %v295_v46 }
  0x8d   : > { %794 = vmatprep.subr.bf16.mxu0 %v793_v20  ;;  %816 = vmatpush1.bf16.msra.mxu1 %v815_v39  ;;  %v408_v52 = vld [vmem:[#allocation7 + $0x40] sm:$0xff]  ;;  %v413_v55 = vld [vmem:[#allocation7 + $0x68] sm:$0xff]  ;;  %v415_v56 = vld [vmem:[#allocation7 + $0x78] sm:$0xff]  ;;  %v805_v61 = vpack.c.bf16 %v314_v54, %v313_v50 }
  0x8e   : > { %818 = vmatprep.subr.bf16.mxu1 %v817_v40  ;;  %v297_v58 = vld [vmem:[#allocation5 + $0x60] sm:$0xff]  ;;  %v298_v59 = vld [vmem:[#allocation5 + $0x68] sm:$0xff]  ;;  %v823_v60 = vpack.c.bf16 %v410_v53, %v408_v52  ;;  %v315_v62 = vld [vmem:[#allocation5 + $0xf0] sm:$0xff]  ;;  %v825_v63 = vpack.c.bf16 %v415_v56, %v413_v55 }
  0x8f   : > { %v412_v0 = vld [vmem:[#allocation7 + $0x60] sm:$0xff]  ;;  %v414_v1 = vld [vmem:[#allocation7 + $0x70] sm:$0xff]  ;;  %v316_v2 = vld [vmem:[#allocation5 + $0xf8] sm:$0xff]  ;;  %v807_v5 = vpack.c.bf16 %v298_v59, %v297_v58 }
  0x90   : > { %796 = vmatpush3.bf16.msra.mxu0 %v795_v28  ;;  %v417_v3 = vld [vmem:[#allocation7 + $0x88] sm:$0xff]  ;;  %v419_v4 = vld [vmem:[#allocation7 + $0x98] sm:$0xff]  ;;  %v299_v6 = vld [vmem:[#allocation5 + $0x70] sm:$0xff]  ;;  %v827_v7 = vpack.c.bf16 %v414_v1, %v412_v0  ;;  %v809_v8 = vpack.c.bf16 %v316_v2, %v315_v62 }
  0x91   : > { %798 = vmatprep.subr.bf16.mxu0 %v797_v34  ;;  %820 = vmatpush1.bf16.msra.mxu1 %v819_v48  ;;  %v300_v9 = vld [vmem:[#allocation5 + $0x78] sm:$0xff]  ;;  %v829_v10 = vpack.c.bf16 %v419_v4, %v417_v3  ;;  %v416_v11 = vld [vmem:[#allocation7 + $0x80] sm:$0xff]  ;;  %v418_v12 = vld [vmem:[#allocation7 + $0x90] sm:$0xff] }
  0x92   : > { %822 = vmatprep.subr.bf16.mxu1 %v821_v51  ;;  %v421_v13 = vld [vmem:[#allocation7 + $0xa8] sm:$0xff]  ;;  %v423_v14 = vld [vmem:[#allocation7 + $0xb8] sm:$0xff]  ;;  %v811_v15 = vpack.c.bf16 %v300_v9, %v299_v6  ;;  %v831_v16 = vpack.c.bf16 %v418_v12, %v416_v11  ;;  %v420_v18 = vld [vmem:[#allocation7 + $0xa0] sm:$0xff] }
  0x93   : > { %v833_v17 = vpack.c.bf16 %v423_v14, %v421_v13  ;;  %v422_v19 = vld [vmem:[#allocation7 + $0xb0] sm:$0xff]  ;;  %v425_v20 = vld [vmem:[#allocation7 + $0xc8] sm:$0xff]  ;;  %v427_v21 = vld [vmem:[#allocation7 + $0xd8] sm:$0xff] }
  0x94   : > { %800 = vmatpush3.bf16.msra.mxu0 %v799_v45  ;;  %v281_v22 = vld [vmem:[%s1326_s12] sm:$0xff]  ;;  %v835_v23 = vpack.c.bf16 %v422_v19, %v420_v18  ;;  %v284_v24 = vld [vmem:[%s1326_s12 + $0x18] sm:$0xff]  ;;  %v837_v25 = vpack.c.bf16 %v427_v21, %v425_v20  ;;  %v283_v26 = vld [vmem:[%s1326_s12 + $0x10] sm:$0xff] }
  0x95   : > { %802 = vmatprep.subr.bf16.mxu0 %v801_v49  ;;  %824 = vmatpush1.bf16.msra.mxu1 %v823_v60  ;;  %v424_v27 = vld [vmem:[#allocation7 + $0xc0] sm:$0xff]  ;;  %v426_v28 = vld [vmem:[#allocation7 + $0xd0] sm:$0xff]  ;;  %v429_v30 = vld [vmem:[#allocation7 + $0xe8] sm:$0xff] }
  0x96   : > { %826 = vmatprep.subr.bf16.mxu1 %v825_v63  ;;  %v839_v29 = vpack.c.bf16 %v426_v28, %v424_v27  ;;  %v431_v31 = vld [vmem:[#allocation7 + $0xf8] sm:$0xff]  ;;  %v428_v33 = vld [vmem:[#allocation7 + $0xe0] sm:$0xff]  ;;  %v430_v34 = vld [vmem:[#allocation7 + $0xf0] sm:$0xff] }
  0x97   : > { %v841_v32 = vpack.c.bf16 %v431_v31, %v429_v30  ;;  %v843_v35 = vpack.c.bf16 %v430_v34, %v428_v33 }
  0x98   : > { %804 = vmatpush3.bf16.msra.mxu0 %v803_v57 }
  0x99   : > { %806 = vmatprep.subr.bf16.mxu0 %v805_v61  ;;  %828 = vmatpush1.bf16.msra.mxu1 %v827_v7 }
  0x9a   : > { %830 = vmatprep.subr.bf16.mxu1 %v829_v10 }
  0x9c   : > { %808 = vmatpush3.bf16.msra.mxu0 %v807_v5 }
  0x9d   : > { %810 = vmatprep.subr.bf16.mxu0 %v809_v8  ;;  %832 = vmatpush1.bf16.msra.mxu1 %v831_v16 }
  0x9e   : > { %834 = vmatprep.subr.bf16.mxu1 %v833_v17 }
  0xa0   : > { %812 = vmatpush3.bf16.msra.mxu0 %v811_v15 }
  0xa1   : > { %836 = vmatpush1.bf16.msra.mxu1 %v835_v23 }
  0xa2   : > { %838 = vmatprep.subr.bf16.mxu1 %v837_v25 }
  0xa3   : > { %382 = vmatmul.mubr.f32.vlgmr.msra.gmra.mrb[0].mxu0 %v281_v22 }
  0xa4   : > { %386 = vmatprep.mubr.f32.mxu0 %v284_v24 }
  0xa5   : > { %840 = vmatpush1.bf16.msra.mxu1 %v839_v29 }
  0xa6   : > { %842 = vmatprep.subr.bf16.mxu1 %v841_v32 }
  0xa7   : > { %387 = vmatmul.mubr.f32.gmra.mrb[2].mxu0 %v283_v26 }
  0xa9   : > { %844 = vmatpush1.bf16.msra.mxu1 %v843_v35 }
 0x176   : > { %v775_v37 = vpop.f32.mrb[0].mxu0 }
 0x177   : > { %v776_v38 = vpop.f32.mrb[1].mxu0 }
 0x178   : > { %v777_v39 = vadd.f32 %v776_v38, %v775_v37 }
 0x17a   : > { %v394_v40 = vmul.f32 0.01, %v777_v39  ;;  %v778_v41 = vpop.f32.mrb[2].mxu0  ;;  %vm392_vm0 = vcmp.gt.f32.partialorder %v777_v39, 0.0 }
 0x17b   : > { %v779_v42 = vpop.f32.mrb[3].mxu0 }
 0x17c   : > { %v780_v43 = vadd.f32 %v779_v42, %v778_v41  ;;  %v396_v44 = vsel %vm392_vm0, %v777_v39, %v394_v40 }
 0x17d   : > { %398 = vst [vmem:[%s1341_s29] sm:$0xff] %v396_v44  ;;  %497 = vmatmul.mubr.f32.vlgmr.msra.gmra.mrb[0].mxu1 %v396_v44 }
 0x17e   : > { %v395_v45 = vmul.f32 0.01, %v780_v43  ;;  %502 = vmatprep.mubr.f32.mxu1 %v1117_v36  ;;  %vm393_vm1 = vcmp.gt.f32.partialorder %v780_v43, 0.0 }
 0x180   : > { %v397_v46 = vsel %vm393_vm1, %v780_v43, %v395_v45 }
 0x181   : > { %399 = vst [vmem:[%s1341_s29 + $0x8] sm:$0xff] %v397_v46  ;;  %503 = vmatmul.mubr.f32.gmra.mrb[2].mxu1 %v397_v46 }
 0x250   : > { %v498_v47 = vpop.f32.mrb[0].mxu1 }
 0x251   : > { %vm509_vm2 = vcmp.gt.f32.partialorder %v498_v47, 0.0  ;;  %v513_v48 = vmul.f32 0.01, %v498_v47  ;;  %v500_v49 = vpop.f32.mrb[1].mxu1 }
 0x252   : > { %vm510_vm3 = vcmp.gt.f32.partialorder %v500_v49, 0.0  ;;  %v514_v50 = vmul.f32 0.01, %v500_v49 }
 0x253   : > { %v517_v51 = vsel %vm509_vm2, %v498_v47, %v513_v48  ;;  %537 = sbr.rel (!%p1480_p9) target bundleno = 630 (0x276), region = 48 }
 0x254   : > { %521 = vst [vmem:[%s1347_s6] sm:$0xff] %v517_v51  ;;  %v518_v52 = vsel %vm510_vm3, %v500_v49, %v514_v50  ;;  %v504_v53 = vpop.f32.mrb[2].mxu1 }
 0x255   : > { %522 = vst [vmem:[%s1347_s6 + $0x8] sm:$0xff] %v518_v52  ;;  %vm511_vm4 = vcmp.gt.f32.partialorder %v504_v53, 0.0  ;;  %v515_v54 = vmul.f32 0.01, %v504_v53  ;;  %v506_v55 = vpop.f32.mrb[3].mxu1 }
 0x256   : > { %vm512_vm5 = vcmp.gt.f32.partialorder %v506_v55, 0.0  ;;  %v516_v56 = vmul.f32 0.01, %v506_v55 }
 0x257   : > { %v519_v57 = vsel %vm511_vm4, %v504_v53, %v515_v54 }
 0x258   : > { %523 = vst [vmem:[%s1347_s6 + $0x10] sm:$0xff] %v519_v57  ;;  %v520_v58 = vsel %vm512_vm5, %v506_v55, %v516_v56 }
 0x259   : > { %524 = vst [vmem:[%s1347_s6 + $0x18] sm:$0xff] %v520_v58 }
 0x25a   : > { %s1490_s13 = smov (!%p540_p10, %s539_s13), 2 }
 0x25b   : > { %s1358_s8 = sshll.u32 %s1490_s13, 7 }
 0x25c   : > { %s544_s20 = ssub.s32 256, %s1358_s8 }
 0x25d   : > { %545 = vsyncadd %s526_s14, %s544_s20  ;;  %p722_p1 = scmp.ne.s32.totalorder %s1358_s8, 0  ;;  %s739_s25 = sshll.u32 %s1170_s19, 8 }
 0x25e   : > { %s1368_s7 = scalar_lea.hbm %s1464_s3, %s739_s25  ;;  %s550_s10 = sshll.u32 %s1341_s29, 4  ;;  %s1371_s10 = int_to_ptr.vmem [resolvable:$true] %s550_s10 }
 0x25f   : > { %s1004_s11 = scalar_lea.vmem %s1371_s10, %s1358_s8  ;;  %s1118_s12 = smov [#allocation8]  }
 0x260   : > { %p1005_p3 = scmp.ne.s32.totalorder %s1371_s10, %s1004_s11  ;;  %s1008_s26 = sshll.u32 %s1118_s12, 4  ;;  %s1009_s26 = int_to_ptr.vmem [resolvable:$false] %s1008_s26 }
 0x261   : > { %s1010_s30 = scalar_lea.vmem %s1009_s26, 512  ;;  %p1011_p11 = scmp.lt.s32.totalorder %s1371_s10, %s1009_s26 }
 0x262   : > { %p1006_p5 = pnand %p1005_p3, %p722_p1  ;;  %p1012_p13 = scmp.lt.s32.totalorder %s1010_s30, %s1004_s11 }
 0x264   : > { %p1007_p6 = pneg %p1006_p5  ;;  %p1013_p0 = por %p1012_p13, %p1011_p11 }
 0x266   : > { %p1014_p12 = pnand %p1013_p0, %p1007_p6 }
 0x268   : > { %1017 = shalt.err (!%p1014_p12)
}
 0x269   : > { %s1018_s29 = scalar_lea.hbm %s1368_s7, %s1358_s8  ;;  %s1022_s25 = scalar_lea.hbm %s1464_s3, 384 }
 0x26a   : > { %p1019_p7 = scmp.ne.s32.totalorder %s1368_s7, %s1018_s29  ;;  %p1023_p9 = scmp.lt.u32.totalorder %s1368_s7, %s1464_s3 }
 0x26b   : > { %p1024_p10 = scmp.lt.u32.totalorder %s1022_s25, %s1018_s29  ;;  %p1026_p5 = scmp.lt.u32.totalorder %s1018_s29, %s1368_s7 }
 0x26c   : > { %p1020_p2 = pnand %p1019_p7, %p722_p1 }
 0x26d   : > { %p1025_p3 = por %p1024_p10, %p1023_p9 }
 0x26e   : > { %p1021_p8 = pneg %p1020_p2 }
 0x26f   : > { %p1027_p6 = por %p1026_p5, %p1025_p3 }
 0x271   : > { %p1028_p11 = pnand %p1027_p6, %p1021_p8 }
 0x273   : > { %1031 = shalt.err (!%p1028_p11)
}
 0x274   : > { %s1119_s11 = smov 128   ;;  %s1120_s12 = smov 8  }
 0x275   : > { %556 = dma.vmem_to_hbm [thread:$0]  (%p722_p1), %s1371_s10, %s1358_s8, %s1368_s7, %s526_s14, %s1119_s11, %s1119_s11, %s1120_s12  }
 0x276 PF: > { %p1481_p13 = scmp.ne.s32.totalorder %s1471_s27, 0 }
 0x277   : > { %s726_s26 = sshll.u32 (%p1481_p13), %s1170_s19, 1 }
 0x278   : > { %559 = sbr.rel (!%p1481_p13) target bundleno = 667 (0x29b), region = 52  ;;  %s561_s30 = ssub.s32 (%p1481_p13), 3, %s726_s26 }
 0x279   : > { %p562_p0 = scmp.lt.s32.totalorder (%p1481_p13), %s561_s30, 2 }
 0x27f   : > { %s1492_s30 = smov (!%p562_p0, %s561_s30), 2 }
 0x280   : > { %s1402_s29 = sshll.u32 %s1492_s30, 8 }
 0x281   : > { %s567_s13 = ssub.s32 512, %s1402_s29 }
 0x282   : > { %568 = vsyncadd %s531_s23, %s567_s13  ;;  %p729_p1 = scmp.ne.s32.totalorder %s1402_s29, 0  ;;  %s742_s27 = sshll.u32 %s1170_s19, 9 }
 0x283   : > { %s1412_s7 = scalar_lea.hbm %s1465_s4, %s742_s27  ;;  %s574_s10 = sshll.u32 %s1347_s6, 4  ;;  %s1415_s10 = int_to_ptr.vmem [resolvable:$true] %s574_s10 }
 0x284   : > { %s1032_s20 = scalar_lea.vmem %s1415_s10, %s1402_s29  ;;  %s1121_s25 = smov [#allocation9]  }
 0x285   : > { %p1033_p12 = scmp.ne.s32.totalorder %s1415_s10, %s1032_s20  ;;  %s1036_s22 = sshll.u32 %s1121_s25, 4  ;;  %s1037_s22 = int_to_ptr.vmem [resolvable:$false] %s1036_s22 }
 0x286   : > { %s1038_s19 = scalar_lea.vmem %s1037_s22, 1024  ;;  %p1039_p8 = scmp.lt.s32.totalorder %s1415_s10, %s1037_s22 }
 0x287   : > { %p1034_p7 = pnand %p1033_p12, %p729_p1  ;;  %p1040_p9 = scmp.lt.s32.totalorder %s1038_s19, %s1032_s20 }
 0x289   : > { %p1035_p2 = pneg %p1034_p7  ;;  %p1041_p10 = por %p1040_p9, %p1039_p8 }
 0x28b   : > { %p1042_p3 = pnand %p1041_p10, %p1035_p2 }
 0x28d   : > { %1045 = shalt.err (!%p1042_p3)
}
 0x28e   : > { %s1046_s6 = scalar_lea.hbm %s1412_s7, %s1402_s29  ;;  %s1050_s12 = scalar_lea.hbm %s1465_s4, 768 }
 0x28f   : > { %p1047_p5 = scmp.ne.s32.totalorder %s1412_s7, %s1046_s6  ;;  %p1051_p13 = scmp.lt.u32.totalorder %s1412_s7, %s1465_s4 }
 0x290   : > { %p1052_p0 = scmp.lt.u32.totalorder %s1050_s12, %s1046_s6  ;;  %p1054_p7 = scmp.lt.u32.totalorder %s1046_s6, %s1412_s7 }
 0x291   : > { %p1048_p6 = pnand %p1047_p5, %p729_p1 }
 0x292   : > { %p1053_p12 = por %p1052_p0, %p1051_p13 }
 0x293   : > { %p1049_p11 = pneg %p1048_p6 }
 0x294   : > { %p1055_p2 = por %p1054_p7, %p1053_p12 }
 0x296   : > { %p1056_p8 = pnand %p1055_p2, %p1049_p11 }
 0x298   : > { %1059 = shalt.err (!%p1056_p8)
}
 0x299   : > { %s1122_s13 = smov 256   ;;  %s1123_s27 = smov 16  }
 0x29a   : > { %580 = dma.vmem_to_hbm [thread:$0]  (%p729_p1), %s1415_s10, %s1402_s29, %s1412_s7, %s531_s23, %s1122_s13, %s1122_s13, %s1123_s27  }
 0x29b PF: > { %s589_s14 = sand.u32 1, %s1094_s15   ;;  %p1482_p9 = scmp.ne.s32.totalorder %s1472_s28, 0 }
 0x29c   : > { %s590_s8 = scalar_lea.sflag [#allocation4], %s589_s14 }
 0x29d   : > { %p864_p10 = pnand %p702_p4, %p1482_p9 }
 0x29f   : > { %1085 = dma.done.wait (!%p864_p10), %s590_s8, 256  }
 0x2a0   : > { %1087 = vsyncadd (!%p864_p10), %s590_s8, 4294967040  ;;  %s599_s20 = scalar_lea.sflag [#allocation10], %s589_s14 }
 0x2a1   : > { %1089 = dma.done.wait (!%p864_p10), %s599_s20, 512  }
 0x2a2   : > { %1091 = vsyncadd (!%p864_p10), %s599_s20, 4294966784  ;;  %p22_p1 = scmp.ge.s32.totalorder %s1174_s21, 4   ;;  %s1483_s15 = smov %s1098_s16 }
 0x2a3   : > { %s1484_s16 = smov %s1102_s17  ;;  %s1485_s17 = smov %s1186_s24 }
 0x2a4   : > { %s1486_s18 = smov %s1174_s21  ;;  %24 = sbr.rel (!%p22_p1) target bundleno = 8 (0x8), region = 102 }
 0x2ab   :  { %604 = vsyncpa [#allocation3], 1 }
 0x2ac   :  { %606 = vsyncpa [#allocation3 + $0x1], 1 }
 0x2ad   :  { %607 = vsyncpa [#allocation6], 1 }
 0x2ae   :  { %608 = vsyncpa [#allocation4], 1 }
 0x2af   :  { %610 = vsyncpa [#allocation4 + $0x1], 1 }
 0x2b0   :  { %611 = vsyncpa [#allocation10], 1 }
 0x2b1   :  { %613 = vsyncpa [#allocation10 + $0x1], 1 }

</bundles_post_ra>
